<compile_context>
chip_gen: v7x
topology: tpu7x:2x2x1
jax: 0.10.0
libtpu: 0.0.40
codegen_flags: <defaults>
</compile_context>

<pallas_src>
import jax
import jax.numpy as jnp
from jax.experimental import pallas as pl
from jax.experimental.pallas import tpu as pltpu


def attention_kernel(enc_ref, w_ref, out_ref):
    """Fused scores + softmax + attention-weighted reduction on packed lanes.

    enc_ref : (Rb, S, L)  L = P*H; lanes [p*H, (p+1)*H) hold batch row r*P + p
    w_ref   : (L, L)      W[l, m] = v_enc[l % H] * (l // H == m // H)
    out_ref : (Rb, L)     packed context vectors (lane-dense 2-D output)
    """
    enc = enc_ref[...]                                   # (Rb, S, L)
    rb, s, l = enc.shape

    # scores[r, s, m] = sum_h enc[batch(r, seg(m)), s, h] * v_enc[h],
    # broadcast across every lane of its own H-lane segment (one MXU matmul).
    scores = jnp.dot(
        enc.reshape(rb * s, l), w_ref[...],
        preferred_element_type=jnp.float32,
        precision=jax.lax.Precision.HIGHEST,
    ).reshape(rb, s, l)

    # Softmax over the sequence (sublane) axis, independently per lane.
    m = jnp.max(scores, axis=1, keepdims=True)           # (Rb, 1, L)
    e = jnp.exp(scores - m)
    denom = jnp.sum(e, axis=1, keepdims=True)            # (Rb, 1, L)
    attn = e / denom                                      # exact divide (correctness fix)

    # context[r, p*H + h] = sum_s attn[r, s, p*H+h] * enc[r, s, p*H+h]
    out_ref[...] = jnp.sum(attn * enc, axis=1)            # (Rb, L)


def fold_encoder_projection(params):
    """Fold dense1..dense4 + to_weight (all affine, no activations) into a
    single (H,) projection acting on the encoder features.  The hidden-state
    half and all bias terms only shift every score of a batch row by the same
    constant; softmax is shift-invariant, so they cannot affect the output."""
    w1, _b1, w2, _b2, w3, _b3, w4, _b4, wv = params
    H = w2.shape[0]
    return (w1[:H] @ w2 @ w3 @ w4 @ wv)[:, 0]             # (H,)


def _pick_block_rows(n_rows, S, L, itemsize=4, enc_budget_bytes=8 << 20, n_buf=3):
    """Largest packed-row block whose n_buf-buffered encoder tile fits the
    budget, using the real (8,128)-tiled VMEM footprint.  Prefers a single
    grid step; when it must split, the block is a multiple of 8 rows so the
    2-D output block stays legal."""
    s_pad = ((S + 7) // 8) * 8
    l_pad = ((L + 127) // 128) * 128
    row_bytes = s_pad * l_pad * itemsize
    cap = max(1, enc_budget_bytes // (n_buf * row_bytes))
    if n_rows <= cap:
        return n_rows
    return max(8, (cap // 8) * 8)


def attention_forward(hidden_state, encoder_outputs, params):
    """hidden_state: (B, H), encoder_outputs: (B, S, H) -> context (B, H).

    hidden_state is accepted for API parity with the PyTorch module but is
    provably irrelevant to the output (see fold_encoder_projection)."""
    del hidden_state
    B, S, H = encoder_outputs.shape
    v_enc = fold_encoder_projection(params).astype(jnp.float32)

    # Pack P batch rows along the 128-lane axis (P*H <= 128).
    P = 128 // H if (H < 128 and 128 % H == 0) else 1
    L = P * H
    Bp = pl.cdiv(B, P) * P
    R = Bp // P

    Rb = _pick_block_rows(R, S, L)
    grid_n = pl.cdiv(R, Rb)
    Rp = grid_n * Rb

    enc = encoder_outputs.astype(jnp.float32)
    if Bp > B:
        enc = jnp.pad(enc, ((0, Bp - B), (0, 0), (0, 0)))
    enc_packed = enc.reshape(R, P, S, H).transpose(0, 2, 1, 3).reshape(R, S, L)
    if Rp > R:
        enc_packed = jnp.pad(enc_packed, ((0, Rp - R), (0, 0), (0, 0)))

    # Folded projection fused with the segment-broadcast matrix:
    #   W[l, m] = v_enc[l % H] * (l // H == m // H)
    lane = jnp.arange(L)
    seg = (lane[:, None] // H == lane[None, :] // H).astype(jnp.float32)
    w_mat = jnp.tile(v_enc, P)[:, None] * seg              # (L, L)

    enc_spec_kwargs = {}
    if grid_n >= 4:
        # Very little compute per byte; a third buffer hides the next-tile DMA.
        enc_spec_kwargs["pipeline_mode"] = pl.Buffered(3)
    enc_spec = pl.BlockSpec((Rb, S, L), lambda b: (b, 0, 0), **enc_spec_kwargs)

    out = pl.pallas_call(
        attention_kernel,
        out_shape=jax.ShapeDtypeStruct((Rp, L), jnp.float32),
        grid_spec=pltpu.PrefetchScalarGridSpec(
            num_scalar_prefetch=0,
            grid=(grid_n,),
            in_specs=[
                enc_spec,                                    # packed encoder outputs
                pl.BlockSpec((L, L), lambda b: (0, 0)),      # folded projection (stays resident)
            ],
            out_specs=pl.BlockSpec((Rb, L), lambda b: (b, 0)),   # lane-dense 2-D context
        ),
        compiler_params=pltpu.CompilerParams(
            dimension_semantics=("parallel",),
            vmem_limit_bytes=32 * 1024 * 1024),
    )(enc_packed, w_mat)

    # Unpack lanes back to (B, H): row r, lanes [p*H, (p+1)*H) -> batch r*P + p.
    return out[:R].reshape(Bp, H)[:B]


def attention_reference(hidden_state, encoder_outputs, params):
    """Plain-JAX reference mirroring the PyTorch forward exactly (unfolded)."""
    B, S, H = encoder_outputs.shape
    w1, b1, w2, b2, w3, b3, w4, b4, wv = params
    hid = jnp.broadcast_to(hidden_state[:, None, :], (B, S, H))
    matching = jnp.concatenate([encoder_outputs, hid], axis=2).reshape(-1, 2 * H)
    x = matching @ w1 + b1
    x = x @ w2 + b2
    x = x @ w3 + b3
    x = x @ w4 + b4
    scores = (x @ wv).reshape(B, S)
    attn = jax.nn.softmax(scores, axis=1)
    context = jnp.einsum("bs,bsh->bh", attn, encoder_outputs)
    return context


def init_params(key, hidden_size):
    """Deterministic synthetic init; weights stored as (in, out)."""
    H = hidden_size
    ks = jax.random.split(key, 9)
    scale = 0.1
    w1 = scale * jax.random.normal(ks[0], (2 * H, H), jnp.float32)
    b1 = scale * jax.random.normal(ks[1], (H,), jnp.float32)
    w2 = scale * jax.random.normal(ks[2], (H, H), jnp.float32)
    b2 = scale * jax.random.normal(ks[3], (H,), jnp.float32)
    w3 = scale * jax.random.normal(ks[4], (H, H), jnp.float32)
    b3 = scale * jax.random.normal(ks[5], (H,), jnp.float32)
    w4 = scale * jax.random.normal(ks[6], (H, H), jnp.float32)
    b4 = scale * jax.random.normal(ks[7], (H,), jnp.float32)
    wv = scale * jax.random.normal(ks[8], (H, 1), jnp.float32)
    return (w1, b1, w2, b2, w3, b3, w4, b4, wv)


if __name__ == "__main__":
    B, S, H = 2, 8, 32
    key = jax.random.PRNGKey(0)
    k_enc, k_hid, k_par = jax.random.split(key, 3)

    encoder_outputs = jax.random.normal(k_enc, (B, S, H), jnp.float32)
    hidden_state = jax.random.normal(k_hid, (B, H), jnp.float32)
    params = init_params(k_par, H)

    context = attention_forward(hidden_state, encoder_outputs, params)
    context = jax.block_until_ready(context)

    ref = attention_reference(hidden_state, encoder_outputs, params)
    assert context.shape == (B, H)
    # Softmax uses an exact divide now; residual error comes only from the
    # algebraic weight fold (different f32 summation order) and MXU pass
    # behavior on the small segment matmul (typically ~1e-6, worst case ~1e-4).
    # Genuine logic errors (wrong segmentation / softmax axis) would be O(0.1+).
    assert jnp.allclose(context, ref, atol=1e-3, rtol=1e-3), "mismatch vs reference"

    print("KERNEL_OK")
</pallas_src>

<mosaic_0001>
module attributes {stable_mosaic.version = 11 : i64} {
  func.func @attention_kernel(%arg0: i32, %arg1: memref<1x8x128xf32, #tpu.memory_space<vmem>>, %arg2: memref<128x128xf32, #tpu.memory_space<vmem>>, %arg3: memref<1x128xf32, #tpu.memory_space<vmem>>) attributes {dimension_semantics = [#tpu.dimension_semantics<parallel>], iteration_bounds = array<i64: 1>, scalar_prefetch = 0 : i64, scratch_operands = 0 : i64, tpu.core_type = #tpu.core_type<tc>, window_params = [{transform_indices = @transform_0, window_bounds = array<i64: 1, 8, 128>}, {pipeline_mode = #tpu.pipeline_mode<synchronous>, transform_indices = @transform_1, window_bounds = array<i64: 128, 128>}, {transform_indices = @transform_2, window_bounds = array<i64: 1, 128>}]} {
    %c0 = arith.constant 0 : index
    %c0_0 = arith.constant 0 : index
    %c0_1 = arith.constant 0 : index
    %0 = vector.load %arg1[%c0, %c0_0, %c0_1] : memref<1x8x128xf32, #tpu.memory_space<vmem>>, vector<1x8x128xf32>
    %1 = vector.shape_cast %0 : vector<1x8x128xf32> to vector<8x128xf32>
    %c0_2 = arith.constant 0 : index
    %c0_3 = arith.constant 0 : index
    %2 = vector.load %arg2[%c0_2, %c0_3] : memref<128x128xf32, #tpu.memory_space<vmem>>, vector<128x128xf32>
    %cst = arith.constant dense<0.000000e+00> : vector<8x128xf32>
    %3 = tpu.matmul %1, %2, %cst {dimension_numbers = #tpu.dot_dimension_numbers<[1], [0], [0], [1], [0, 0, 1, 1], [], []>, precision = #tpu.contract_precision<fp32>} : vector<8x128xf32>, vector<128x128xf32>, vector<8x128xf32> -> vector<8x128xf32>
    %4 = vector.shape_cast %3 : vector<8x128xf32> to vector<1x8x128xf32>
    %cst_4 = arith.constant dense<0xFF800000> : vector<1x128xf32>
    %5 = vector.multi_reduction <maximumf>, %4, %cst_4 [1] : vector<1x8x128xf32> to vector<1x128xf32>
    %6 = vector.shape_cast %5 : vector<1x128xf32> to vector<1x1x128xf32>
    %7 = vector.broadcast %6 : vector<1x1x128xf32> to vector<1x8x128xf32>
    %8 = arith.subf %4, %7 : vector<1x8x128xf32>
    %9 = math.exp %8 : vector<1x8x128xf32>
    %cst_5 = arith.constant dense<0.000000e+00> : vector<1x128xf32>
    %10 = vector.multi_reduction <add>, %9, %cst_5 [1] : vector<1x8x128xf32> to vector<1x128xf32>
    %11 = vector.shape_cast %10 : vector<1x128xf32> to vector<1x1x128xf32>
    %12 = vector.broadcast %11 : vector<1x1x128xf32> to vector<1x8x128xf32>
    %13 = arith.divf %9, %12 : vector<1x8x128xf32>
    %14 = arith.mulf %13, %0 : vector<1x8x128xf32>
    %cst_6 = arith.constant dense<0.000000e+00> : vector<1x128xf32>
    %15 = vector.multi_reduction <add>, %14, %cst_6 [1] : vector<1x8x128xf32> to vector<1x128xf32>
    %c0_7 = arith.constant 0 : index
    %c0_8 = arith.constant 0 : index
    %16 = vector.load %arg3[%c0_7, %c0_8] : memref<1x128xf32, #tpu.memory_space<vmem>>, vector<1x128xf32>
    tpu.vector_store %arg3[%c0_7, %c0_8], %15 {strides = array<i32>} : memref<1x128xf32, #tpu.memory_space<vmem>>, vector<1x128xf32>,
    return
  }
  func.func @transform_0(%arg0: i32) -> (i32, i32, i32) {
    %c0_i32 = arith.constant 0 : i32
    %c0_i32_0 = arith.constant 0 : i32
    %c0_i32_1 = arith.constant 0 : i32
    return %arg0, %c0_i32, %c0_i32_0 : i32, i32, i32
  }
  func.func @transform_1(%arg0: i32) -> (i32, i32) {
    %c0_i32 = arith.constant 0 : i32
    %c0_i32_0 = arith.constant 0 : i32
    %c0_i32_1 = arith.constant 0 : i32
    return %c0_i32, %c0_i32_0 : i32, i32
  }
  func.func @transform_2(%arg0: i32) -> (i32, i32) {
    %c0_i32 = arith.constant 0 : i32
    %c0_i32_0 = arith.constant 0 : i32
    return %arg0, %c0_i32 : i32, i32
  }
}

</mosaic_0001>

<bundles_post_ra>
// kernel: tpu_custom_call.1
= control target key start
LH: loop header
LB: loop body
LE: loop exit
PB: predicated region body
PF: predicated region fallthrough
CT: control target
= control target key end

     0   :  { %7 = vsyncpa [#allocation3], 0  ;;  %s1604_s0 = inlined_call_operand.hbm [shape: f32[1,8,128], index: 0, kind: input, shape index: {}]   ;;  %s1605_s1 = inlined_call_operand.hbm [shape: f32[128,128], index: 1, kind: input, shape index: {}]   ;;  %s1606_s2 = inlined_call_operand.hbm [shape: f32[1,128], index: 2, kind: output, shape index: {}]  }
   0x1   :  { %8 = vsyncpa [#allocation6], 0 }
   0x2   :  { %9 = vsyncpa [#allocation4], 0  ;;  %s1286_s9 = smov [#allocation2]   ;;  %s1287_s11 = smov [#allocation5]  }
   0x3   :  { %s16_s10 = sshll.u32 %s1286_s9, 4  ;;  %s25_s12 = sshll.u32 %s1287_s11, 4  ;;  %s17_s10 = int_to_ptr.vmem [resolvable:$true] %s16_s10  ;;  %s1309_s12 = int_to_ptr.vmem [resolvable:$true] %s25_s12 }
   0x4   :  { %s1214_s15 = scalar_lea.hbm %s1604_s0, 128 }
   0x5   :  { %p1215_p0 = scmp.ne.s32.totalorder %s1604_s0, %s1214_s15  ;;  %p1218_p1 = scmp.lt.u32.totalorder %s1214_s15, %s1604_s0 }
   0x7   :  { %p1220_p2 = pnand %p1218_p1, %p1215_p0 }
   0x9   :  { %1223 = shalt.err (!%p1220_p2)
}
   0xa   :  { %s1224_s20 = scalar_lea.vmem %s17_s10, 128  ;;  %p1229_p4 = scmp.lt.s32.totalorder %s17_s10, %s17_s10 }
   0xb   :  { %p1225_p3 = scmp.ne.s32.totalorder %s17_s10, %s1224_s20  ;;  %p1230_p5 = scmp.lt.s32.totalorder %s1224_s20, %s1224_s20 }
   0xd   :  { %p1231_p6 = por %p1230_p5, %p1229_p4 }
   0xf   :  { %p1232_p7 = pnand %p1231_p6, %p1225_p3 }
  0x11   :  { %1235 = shalt.err (!%p1232_p7)
}
  0x12   :  { %19 = dma.hbm_to_vmem [thread:$0]  %s1604_s0, 128, %s17_s10, [#allocation3]  }
  0x13   :  { %s1236_s25 = scalar_lea.hbm %s1605_s1, 2048 }
  0x14   :  { %p1237_p8 = scmp.ne.s32.totalorder %s1605_s1, %s1236_s25  ;;  %p1240_p9 = scmp.lt.u32.totalorder %s1236_s25, %s1605_s1 }
  0x16   :  { %p1242_p10 = pnand %p1240_p9, %p1237_p8 }
  0x18   :  { %1245 = shalt.err (!%p1242_p10)
}
  0x19   :  { %s1246_s30 = scalar_lea.vmem %s1309_s12, 2048  ;;  %p1251_p12 = scmp.lt.s32.totalorder %s1309_s12, %s1309_s12 }
  0x1a   :  { %p1247_p11 = scmp.ne.s32.totalorder %s1309_s12, %s1246_s30  ;;  %p1252_p13 = scmp.lt.s32.totalorder %s1246_s30, %s1246_s30 }
  0x1c   :  { %p1253_p0 = por %p1252_p13, %p1251_p12 }
  0x1e   :  { %p1254_p1 = pnand %p1253_p0, %p1247_p11 }
  0x20   :  { %1257 = shalt.err (!%p1254_p1)
}
  0x21   :  { %s1288_s0 = smov 128   ;;  %s1289_s3 = smov 8  }
  0x22   :  { %31 = dma.hbm_to_vmem [thread:$0]  %s1605_s1, 2048, %s1309_s12, [#allocation6], %s1288_s0, %s1288_s0, %s1289_s3  }
  0x23   :  { %1280 = dma.done.wait [#allocation3], 128  }
  0x24   :  { %1281 = vsyncadd [#allocation3], 4294967168 }
  0x25   :  { %1282 = dma.done.wait [#allocation6], 2048  }
  0x26   :  { %1283 = vsyncadd [#allocation6], 4294965248  ;;  %v1290_v0 = vmov 0.0|0.0   ;;  %vm1291_vm0 = vmmov 0   ;;  %v1292_v1 = vmov 0.0   ;;  %v39_v2 = vld [vmem:[#allocation5] sm:$0xff] }
  0x27   :  { %1049 = vmatprep.subr.bf16.mxu1 %v1290_v0  ;;  %1121 = vmatprep.subr.bf16.mxu0 %v1290_v0  ;;  %v40_v3 = vld [vmem:[#allocation5 + $0x8] sm:$0xff]  ;;  %v41_v4 = vld [vmem:[#allocation5 + $0x10] sm:$0xff]  ;;  %v56_v5 = vand.u32 4294901760, %v39_v2  ;;  %v42_v7 = vld [vmem:[#allocation5 + $0x18] sm:$0xff]  ;;  %s1293_s1 = smov [#allocation7]  }
  0x28   :  { %871 = vmatprep.mubr.msk.f32.mxu1 %vm1291_vm0, %v1292_v1  ;;  %976 = vmatprep.mubr.msk.f32.mxu0 %vm1291_vm0, %v1292_v1  ;;  %v59_v6 = vand.u32 4294901760, %v40_v3  ;;  %v62_v8 = vand.u32 4294901760, %v41_v4  ;;  %v65_v9 = vand.u32 4294901760, %v42_v7  ;;  %v43_v10 = vld [vmem:[#allocation5 + $0x20] sm:$0xff]  ;;  %v44_v11 = vld [vmem:[#allocation5 + $0x28] sm:$0xff]  ;;  %v45_v16 = vld [vmem:[#allocation5 + $0x30] sm:$0xff] }
  0x29   :  { %v68_v14 = vand.u32 4294901760, %v43_v10  ;;  %v71_v15 = vand.u32 4294901760, %v44_v11  ;;  %v46_v17 = vld [vmem:[#allocation5 + $0x38] sm:$0xff]  ;;  %v74_v19 = vand.u32 4294901760, %v45_v16  ;;  %v1360_v21 = vld [vmem:[#allocation5 + $0x40] sm:$0xff]  ;;  %v1362_v22 = vld [vmem:[#allocation5 + $0x48] sm:$0xff]  ;;  %v1378_v29 = vsub.f32 %v39_v2, %v56_v5 }
  0x2a   :  { %v1346_v12 = vpack.c.bf16 %v59_v6, %v56_v5  ;;  %v1350_v13 = vpack.c.bf16 %v65_v9, %v62_v8  ;;  %v77_v20 = vand.u32 4294901760, %v46_v17  ;;  %v80_v24 = vand.u32 4294901760, %v1360_v21  ;;  %v1370_v26 = vld [vmem:[#allocation2] sm:$0xff]  ;;  %v1374_v27 = vld [vmem:[#allocation5 + $0x50] sm:$0xff]  ;;  %v1391_v35 = vld [vmem:[#allocation5 + $0x60] sm:$0xff]  ;;  %s727_s6 = sshll.u32 %s1293_s1, 4  ;;  %s728_s6 = int_to_ptr.vmem [resolvable:$true] %s727_s6 }
  0x2b   :  { %v1356_v18 = vpack.c.bf16 %v71_v15, %v68_v14  ;;  %v83_v25 = vand.u32 4294901760, %v1362_v22  ;;  %v1376_v28 = vld [vmem:[#allocation5 + $0x58] sm:$0xff]  ;;  %v1381_v30 = vand.u32 4294901760, %v1370_v26  ;;  %v1383_v31 = vsub.f32 %v40_v3, %v59_v6  ;;  %v1395_v36 = vld [vmem:[#allocation5 + $0x68] sm:$0xff]  ;;  %v1415_v43 = vld [vmem:[#allocation5 + $0x70] sm:$0xff]  ;;  %s1258_s7 = scalar_lea.vmem %s728_s6, 16  ;;  %p1263_p3 = scmp.lt.s32.totalorder %s728_s6, %s728_s6 }
  0x2c   :  { %1051 = vmatpush3.bf16.msra.mxu1 %v1346_v12  ;;  %1123 = vmatpush3.bf16.msra.mxu0 %v1346_v12  ;;  %v1366_v23 = vpack.c.bf16 %v77_v20, %v74_v19  ;;  %v86_v33 = vand.u32 4294901760, %v1374_v27  ;;  %v89_v34 = vand.u32 4294901760, %v1376_v28  ;;  %v1397_v37 = vsub.f32 %v41_v4, %v62_v8  ;;  %v1417_v44 = vld [vmem:[#allocation5 + $0x78] sm:$0xff]  ;;  %p1259_p2 = scmp.ne.s32.totalorder %s728_s6, %s1258_s7  ;;  %s1262_s8 = scalar_lea.vmem %s728_s6, 32 }
  0x2d   :  { %1052 = vmatprep.subr.bf16.mxu1 %v1290_v0  ;;  %1124 = vmatprep.subr.bf16.mxu0 %v1290_v0  ;;  %v1387_v32 = vpack.c.bf16 %v83_v25, %v80_v24  ;;  %v1399_v38 = vsub.f32 %v42_v7, %v65_v9  ;;  %v92_v39 = vand.u32 4294901760, %v1391_v35  ;;  %v1404_v40 = vsub.f32 %v1370_v26, %v1381_v30  ;;  %p1264_p4 = scmp.lt.s32.totalorder %s1262_s8, %s1258_s7 }
  0x2e   :  { %v1412_v41 = vpack.c.bf16 %v89_v34, %v86_v33  ;;  %v95_v42 = vand.u32 4294901760, %v1395_v36  ;;  %v149_v45 = vand.u32 4294901760, %v1378_v29  ;;  %v156_v46 = vand.u32 4294901760, %v1383_v31 }
  0x2f   :  { %v1423_v47 = vsub.f32 %v43_v10, %v68_v14  ;;  %v1425_v48 = vsub.f32 %v44_v11, %v71_v15  ;;  %v98_v49 = vand.u32 4294901760, %v1415_v43  ;;  %v101_v50 = vand.u32 4294901760, %v1417_v44  ;;  %p1265_p5 = por %p1264_p4, %p1263_p3 }
  0x30   :  { %1054 = vmatpush3.bf16.msra.mxu1 %v1350_v13  ;;  %1126 = vmatpush3.bf16.msra.mxu0 %v1350_v13  ;;  %v138_v51 = vand.u32 4294901760, %v1404_v40  ;;  %v163_v52 = vand.u32 4294901760, %v1397_v37  ;;  %v1437_v53 = vpack.c.bf16 %v95_v42, %v92_v39  ;;  %v150_v54 = vsub.f32 %v1378_v29, %v149_v45 }
  0x31   :  { %1055 = vmatprep.subr.bf16.mxu1 %v1290_v0  ;;  %1127 = vmatprep.subr.bf16.mxu0 %v1290_v0  ;;  %v157_v55 = vsub.f32 %v1383_v31, %v156_v46  ;;  %v170_v56 = vand.u32 4294901760, %v1399_v38  ;;  %v1444_v57 = vsub.f32 %v45_v16, %v74_v19  ;;  %v1446_v58 = vsub.f32 %v46_v17, %v77_v20  ;;  %p1266_p6 = pnand %p1265_p5, %p1259_p2 }
  0x32   :  { %v139_v59 = vsub.f32 %v1404_v40, %v138_v51  ;;  %v164_v60 = vsub.f32 %v1397_v37, %v163_v52  ;;  %v177_v61 = vand.u32 4294901760, %v1423_v47  ;;  %v184_v62 = vand.u32 4294901760, %v1425_v48 }
  0x33   :  { %v1458_v63 = vpack.c.bf16 %v101_v50, %v98_v49  ;;  %v151_v2 = vand.u32 4294901760, %v150_v54  ;;  %v158_v3 = vand.u32 4294901760, %v157_v55  ;;  %v171_v4 = vsub.f32 %v1399_v38, %v170_v56 }
  0x34   :  { %1057 = vmatpush3.bf16.msra.mxu1 %v1356_v18  ;;  %1129 = vmatpush3.bf16.msra.mxu0 %v1356_v18  ;;  %v1464_v5 = vsub.f32 %v1360_v21, %v80_v24  ;;  %v1467_v6 = vsub.f32 %v1362_v22, %v83_v25  ;;  %v1146_v7 = vpack.c.bf16 %v156_v46, %v149_v45  ;;  %v140_v8 = vand.u32 4294901760, %v139_v59 }
  0x35   :  { %1058 = vmatprep.subr.bf16.mxu1 %v1290_v0  ;;  %1130 = vmatprep.subr.bf16.mxu0 %v1290_v0  ;;  %v165_v9 = vand.u32 4294901760, %v164_v60  ;;  %v178_v10 = vsub.f32 %v1423_v47, %v177_v61  ;;  %v185_v11 = vsub.f32 %v1425_v48, %v184_v62  ;;  %v1074_v14 = vpack.c.bf16 %v158_v3, %v151_v2 }
  0x36   :  { %v172_v15 = vand.u32 4294901760, %v171_v4  ;;  %v191_v16 = vand.u32 4294901760, %v1444_v57  ;;  %v198_v17 = vand.u32 4294901760, %v1446_v58  ;;  %v1480_v19 = vsub.f32 %v1374_v27, %v86_v33 }
  0x37   :  { %v1485_v20 = vsub.f32 %v1376_v28, %v89_v34  ;;  %v1149_v21 = vpack.c.bf16 %v170_v56, %v163_v52  ;;  %v179_v22 = vand.u32 4294901760, %v178_v10  ;;  %v186_v24 = vand.u32 4294901760, %v185_v11 }
  0x38   :  { %1060 = vmatpush3.bf16.msra.mxu1 %v1366_v23  ;;  %1132 = vmatpush3.bf16.msra.mxu0 %v1366_v23  ;;  %v205_v25 = vand.u32 4294901760, %v1464_v5  ;;  %v1077_v45 = vpack.c.bf16 %v172_v15, %v165_v9  ;;  %v192_v46 = vsub.f32 %v1444_v57, %v191_v16  ;;  %v199_v27 = vsub.f32 %v1446_v58, %v198_v17 }
  0x39   :  { %1061 = vmatprep.subr.bf16.mxu1 %v1290_v0  ;;  %1133 = vmatprep.subr.bf16.mxu0 %v1290_v0  ;;  %v212_v33 = vand.u32 4294901760, %v1467_v6  ;;  %v1496_v28 = vsub.f32 %v1391_v35, %v92_v39  ;;  %v1501_v34 = vsub.f32 %v1395_v36, %v95_v42  ;;  %v1152_v52 = vpack.c.bf16 %v184_v62, %v177_v61 }
  0x3a   :  { %v206_v54 = vsub.f32 %v1464_v5, %v205_v25  ;;  %v219_v55 = vand.u32 4294901760, %v1480_v19  ;;  %v193_v35 = vand.u32 4294901760, %v192_v46  ;;  %v200_v39 = vand.u32 4294901760, %v199_v27 }
  0x3b   :  { %v213_v56 = vsub.f32 %v1467_v6, %v212_v33  ;;  %v226_v36 = vand.u32 4294901760, %v1485_v20  ;;  %v1516_v42 = vsub.f32 %v1415_v43, %v98_v49  ;;  %v1521_v59 = vsub.f32 %v1417_v44, %v101_v50 }
  0x3c   :  { %1063 = vmatpush3.bf16.msra.mxu1 %v1387_v32  ;;  %1135 = vmatpush3.bf16.msra.mxu0 %v1387_v32  ;;  %v1155_v60 = vpack.c.bf16 %v198_v17, %v191_v16  ;;  %v207_v61 = vand.u32 4294901760, %v206_v54  ;;  %v220_v62 = vsub.f32 %v1480_v19, %v219_v55  ;;  %v233_v2 = vand.u32 4294901760, %v1496_v28 }
  0x3d   :  { %1064 = vmatprep.subr.bf16.mxu1 %v1290_v0  ;;  %1136 = vmatprep.subr.bf16.mxu0 %v1290_v0  ;;  %v1083_v3 = vpack.c.bf16 %v200_v39, %v193_v35  ;;  %v214_v4 = vand.u32 4294901760, %v213_v56  ;;  %v240_v43 = vand.u32 4294901760, %v1501_v34  ;;  %v1158_v44 = vpack.c.bf16 %v212_v33, %v205_v25 }
  0x3e   :  { %v221_v49 = vand.u32 4294901760, %v220_v62  ;;  %v234_v50 = vsub.f32 %v1496_v28, %v233_v2  ;;  %v1161_v15 = vpack.c.bf16 %v226_v36, %v219_v55  ;;  %v1101_v54 = vpack.c.bf16 %v1399_v38, %v1397_v37 }
  0x3f   :  { %v1086_v9 = vpack.c.bf16 %v214_v4, %v207_v61  ;;  %v241_v11 = vsub.f32 %v1501_v34, %v240_v43 }
  0x40   :  { %1066 = vmatpush3.bf16.msra.mxu1 %v1412_v41  ;;  %1138 = vmatpush3.bf16.msra.mxu0 %v1412_v41  ;;  %v235_v16 = vand.u32 4294901760, %v234_v50 }
  0x41   :  { %1067 = vmatprep.subr.bf16.mxu1 %v1290_v0  ;;  %1139 = vmatprep.subr.bf16.mxu0 %v1290_v0 }
  0x44   :  { %1069 = vmatpush3.bf16.msra.mxu1 %v1437_v53  ;;  %1141 = vmatpush3.bf16.msra.mxu0 %v1437_v53 }
  0x45   :  { %1070 = vmatprep.subr.bf16.mxu1 %v1290_v0  ;;  %1142 = vmatprep.subr.bf16.mxu0 %v1290_v0 }
  0x48   :  { %1072 = vmatpush3.bf16.msra.mxu1 %v1458_v63  ;;  %1144 = vmatpush3.bf16.msra.mxu0 %v1458_v63 }
  0x49   :  { %1073 = vmatprep.subr.bf16.mxu1 %v1290_v0  ;;  %1145 = vmatprep.subr.bf16.mxu0 %v1290_v0 }
  0x4b   :  { %872 = vmatmul.mubr.f32.vlgmr.msra.gmra.mrb[0].mxu1 %v140_v8  ;;  %977 = vmatmul.mubr.f32.vlgmr.msra.gmra.mrb[0].mxu0 %v138_v51  ;;  %v1080_v51 = vpack.c.bf16 %v186_v24, %v179_v22  ;;  %v247_v8 = vand.u32 4294901760, %v1516_v42 }
  0x4c   :  { %1075 = vmatpush3.bf16.msra.mxu1 %v1074_v14  ;;  %1147 = vmatpush3.bf16.msra.mxu0 %v1146_v7  ;;  %v227_v7 = vsub.f32 %v1485_v20, %v226_v36  ;;  %v254_v14 = vand.u32 4294901760, %v1521_v59 }
  0x4d   :  { %1076 = vmatprep.subr.bf16.mxu1 %v1290_v0  ;;  %1148 = vmatprep.subr.bf16.mxu0 %v1290_v0  ;;  %v248_v22 = vsub.f32 %v1516_v42, %v247_v8 }
  0x4e   :  { %906 = vmatprep.mubr.msk.f32.mxu1 %vm1291_vm0, %v1292_v1  ;;  %1011 = vmatprep.mubr.msk.f32.mxu0 %vm1291_vm0, %v1292_v1  ;;  %v228_v10 = vand.u32 4294901760, %v227_v7  ;;  %v255_v24 = vsub.f32 %v1521_v59, %v254_v14 }
  0x4f   :  { %v249_v46 = vand.u32 4294901760, %v248_v22 }
  0x50   :  { %1078 = vmatpush3.bf16.msra.mxu1 %v1077_v45  ;;  %1150 = vmatpush3.bf16.msra.mxu0 %v1149_v21  ;;  %v1089_v17 = vpack.c.bf16 %v228_v10, %v221_v49  ;;  %v242_v21 = vand.u32 4294901760, %v241_v11  ;;  %v1164_v45 = vpack.c.bf16 %v240_v43, %v233_v2  ;;  %v256_v27 = vand.u32 4294901760, %v255_v24 }
  0x51   :  { %1079 = vmatprep.subr.bf16.mxu1 %v1290_v0  ;;  %1151 = vmatprep.subr.bf16.mxu0 %v1290_v0 }
  0x52   :  { %v1092_v25 = vpack.c.bf16 %v242_v21, %v235_v16  ;;  %v1095_v33 = vpack.c.bf16 %v256_v27, %v249_v46 }
  0x54   :  { %1081 = vmatpush3.bf16.msra.mxu1 %v1080_v51  ;;  %1153 = vmatpush3.bf16.msra.mxu0 %v1152_v52  ;;  %v1167_v51 = vpack.c.bf16 %v254_v14, %v247_v8  ;;  %v1098_v52 = vpack.c.bf16 %v1383_v31, %v1378_v29  ;;  %v1104_v29 = vpack.c.bf16 %v1425_v48, %v1423_v47 }
  0x55   :  { %1082 = vmatprep.subr.bf16.mxu1 %v1290_v0  ;;  %1154 = vmatprep.subr.bf16.mxu0 %v1290_v0 }
  0x58   :  { %1084 = vmatpush3.bf16.msra.mxu1 %v1083_v3  ;;  %1156 = vmatpush3.bf16.msra.mxu0 %v1155_v60 }
  0x59   :  { %1085 = vmatprep.subr.bf16.mxu1 %v1290_v0  ;;  %1157 = vmatprep.subr.bf16.mxu0 %v1290_v0 }
  0x5c   :  { %1087 = vmatpush3.bf16.msra.mxu1 %v1086_v9  ;;  %1159 = vmatpush3.bf16.msra.mxu0 %v1158_v44 }
  0x5d   :  { %1088 = vmatprep.subr.bf16.mxu1 %v1290_v0  ;;  %1160 = vmatprep.subr.bf16.mxu0 %v1290_v0 }
  0x60   :  { %1090 = vmatpush3.bf16.msra.mxu1 %v1089_v17  ;;  %1162 = vmatpush3.bf16.msra.mxu0 %v1161_v15 }
  0x61   :  { %1091 = vmatprep.subr.bf16.mxu1 %v1290_v0  ;;  %1163 = vmatprep.subr.bf16.mxu0 %v1290_v0 }
  0x64   :  { %1093 = vmatpush3.bf16.msra.mxu1 %v1092_v25  ;;  %1165 = vmatpush3.bf16.msra.mxu0 %v1164_v45 }
  0x65   :  { %1094 = vmatprep.subr.bf16.mxu1 %v1290_v0  ;;  %1166 = vmatprep.subr.bf16.mxu0 %v1290_v0 }
  0x68   :  { %1096 = vmatpush3.bf16.msra.mxu1 %v1095_v33  ;;  %1168 = vmatpush3.bf16.msra.mxu0 %v1167_v51 }
  0x69   :  { %1097 = vmatprep.subr.bf16.mxu1 %v1290_v0  ;;  %1169 = vmatprep.subr.bf16.mxu0 %v1290_v0 }
  0x6b   :  { %907 = vmatmul.mubr.f32.vlgmr.msra.gmra.mrb[0].mxu1 %v1381_v30  ;;  %1012 = vmatmul.mubr.f32.vlgmr.msra.gmra.mrb[0].mxu0 %v1381_v30 }
  0x6c   :  { %1099 = vmatpush3.bf16.msra.mxu1 %v1098_v52  ;;  %1171 = vmatpush3.bf16.msra.mxu0 %v1346_v12  ;;  %v1107_v12 = vpack.c.bf16 %v1446_v58, %v1444_v57 }
  0x6d   :  { %1100 = vmatprep.subr.bf16.mxu1 %v1290_v0  ;;  %1172 = vmatprep.subr.bf16.mxu0 %v1290_v0 }
  0x6e   :  { %941 = vmatprep.mubr.msk.f32.mxu1 %vm1291_vm0, %v1292_v1  ;;  %1046 = vmatprep.mubr.msk.f32.mxu0 %vm1291_vm0, %v1292_v1  ;;  %v1110_v1 = vpack.c.bf16 %v1467_v6, %v1464_v5 }
  0x70   :  { %1102 = vmatpush3.bf16.msra.mxu1 %v1101_v54  ;;  %1174 = vmatpush3.bf16.msra.mxu0 %v1350_v13  ;;  %v1113_v13 = vpack.c.bf16 %v1485_v20, %v1480_v19 }
  0x71   :  { %1103 = vmatprep.subr.bf16.mxu1 %v1290_v0  ;;  %1175 = vmatprep.subr.bf16.mxu0 %v1290_v0 }
  0x74   :  { %1105 = vmatpush3.bf16.msra.mxu1 %v1104_v29  ;;  %1177 = vmatpush3.bf16.msra.mxu0 %v1356_v18  ;;  %v1116_v18 = vpack.c.bf16 %v1501_v34, %v1496_v28 }
  0x75   :  { %1106 = vmatprep.subr.bf16.mxu1 %v1290_v0  ;;  %1178 = vmatprep.subr.bf16.mxu0 %v1290_v0 }
  0x78   :  { %1108 = vmatpush3.bf16.msra.mxu1 %v1107_v12  ;;  %1180 = vmatpush3.bf16.msra.mxu0 %v1366_v23  ;;  %v1119_v23 = vpack.c.bf16 %v1521_v59, %v1516_v42 }
  0x79   :  { %1109 = vmatprep.subr.bf16.mxu1 %v1290_v0  ;;  %1181 = vmatprep.subr.bf16.mxu0 %v1290_v0 }
  0x7c   :  { %1111 = vmatpush3.bf16.msra.mxu1 %v1110_v1  ;;  %1183 = vmatpush3.bf16.msra.mxu0 %v1387_v32 }
  0x7d   :  { %1112 = vmatprep.subr.bf16.mxu1 %v1290_v0  ;;  %1184 = vmatprep.subr.bf16.mxu0 %v1290_v0 }
  0x80   :  { %1114 = vmatpush3.bf16.msra.mxu1 %v1113_v13  ;;  %1186 = vmatpush3.bf16.msra.mxu0 %v1412_v41 }
  0x81   :  { %1115 = vmatprep.subr.bf16.mxu1 %v1290_v0  ;;  %1187 = vmatprep.subr.bf16.mxu0 %v1290_v0 }
  0x84   :  { %1117 = vmatpush3.bf16.msra.mxu1 %v1116_v18  ;;  %1189 = vmatpush3.bf16.msra.mxu0 %v1437_v53 }
  0x85   :  { %1118 = vmatprep.subr.bf16.mxu1 %v1290_v0  ;;  %1190 = vmatprep.subr.bf16.mxu0 %v1290_v0 }
  0x88   :  { %1120 = vmatpush3.bf16.msra.mxu1 %v1119_v23  ;;  %1192 = vmatpush3.bf16.msra.mxu0 %v1458_v63 }
  0x8b   :  { %942 = vmatmul.mubr.f32.vlgmr.msra.gmra.mrb[0].mxu1 %v1404_v40  ;;  %1047 = vmatmul.mubr.f32.vlgmr.msra.gmra.mrb[0].mxu0 %v1381_v30 }
 0x15e   :  { %v397_v31 = vpop.f32.mrb[0].mxu1  ;;  %v692_v32 = vpop.f32.mrb[0].mxu0 }
 0x15f   :  { %v1193_v37 = vadd.f32 %v692_v32, %v397_v31  ;;  %v943_v38 = vpop.f32.mrb[1].mxu1  ;;  %v1048_v41 = vpop.f32.mrb[1].mxu0 }
 0x161   :  { %v696_v47 = vrot.slane %v1193_v37, 4 }
 0x163   :  { %v697_v48 = vmax.f32 %v1193_v37, %v696_v47 }
 0x165   :  { %v698_v53 = vrot.slane %v697_v48, 2 }
 0x167   :  { %v699_v57 = vmax.f32 %v697_v48, %v698_v53 }
 0x169   :  { %v700_v58 = vrot.slane %v699_v57, 1 }
 0x16b   :  { %v701_v5 = vmax.f32 %v699_v57, %v700_v58 }
 0x16d   :  { %v702_v6 = vsub.f32 %v1193_v37, %v701_v5 }
 0x16f   :  { %v703_v0 = vmul.f32 1.442695, %v702_v6 }
 0x171   :  { %1210 = vpow2.f32 %v703_v0 }
 0x17b   :  { %v1211_v19 = vpop.eup %1210 }
 0x17c   :  { %v705_v63 = vrot.slane %v1211_v19, 4 }
 0x17e   :  { %v706_v20 = vadd.f32 %v1211_v19, %v705_v63 }
 0x180   :  { %v707_v40 = vrot.slane %v706_v20, 2 }
 0x182   :  { %v708_v28 = vadd.f32 %v707_v40, %v706_v20 }
 0x184   :  { %v709_v30 = vrot.slane %v708_v28, 1 }
 0x186   :  { %v710_v34 = vadd.f32 %v709_v30, %v708_v28 }
 0x188   :  { %1212 = vrcp.f32 %v710_v34 }
 0x192   :  { %v1213_v55 = vpop.eup %1212 }
 0x193   :  { %v712_v35 = vmul.f32 %v1213_v55, %v1211_v19 }
 0x195   :  { %v713_v39 = vmul.f32 %v712_v35, %v1370_v26 }
 0x197   :  { %v714_v56 = vrot.slane %v713_v39, 4 }
 0x199   :  { %v715_v36 = vadd.f32 %v714_v56, %v713_v39 }
 0x19b   :  { %v716_v42 = vrot.slane %v715_v36, 2 }
 0x19d   :  { %v717_v59 = vadd.f32 %v716_v42, %v715_v36 }
 0x19f   :  { %v718_v60 = vrot.slane %v717_v59, 1 }
 0x1a1   :  { %v719_v61 = vadd.f32 %v718_v60, %v717_v59 }
 0x1a3   :  { %720 = vst [vmem:[#allocation7] sm:$0x1] %v719_v61 }
 0x1a4   :  { %1269 = shalt.err (!%p1266_p6)
}
 0x1a5   :  { %s1270_s11 = scalar_lea.hbm %s1606_s2, 16 }
 0x1a6   :  { %p1271_p7 = scmp.ne.s32.totalorder %s1606_s2, %s1270_s11  ;;  %p1274_p8 = scmp.lt.u32.totalorder %s1270_s11, %s1606_s2 }
 0x1a8   :  { %p1276_p9 = pnand %p1274_p8, %p1271_p7 }
 0x1aa   :  { %1279 = shalt.err (!%p1276_p9)
}
 0x1ab   :  { %730 = dma.vmem_to_hbm [thread:$0]  %s728_s6, 16, %s1606_s2, [#allocation4]  }
 0x1ac   :  { %1284 = dma.done.wait [#allocation4], 16  }
 0x1ad   :  { %1285 = vsyncadd [#allocation4], 4294967280 }
 0x1ae   :  { %734 = vsyncpa [#allocation3], 1 }
 0x1af   :  { %735 = vsyncpa [#allocation6], 1 }
 0x1b0   :  { %736 = vsyncpa [#allocation4], 1 }

</bundles_post_ra>
